<compile_context>
chip_gen: v7x
topology: tpu7x:2x2x1
jax: 0.10.0
libtpu: 0.0.40
codegen_flags: <defaults>
</compile_context>

<pallas_src>
import functools

import numpy as np
import jax
import jax.numpy as jnp
from jax.experimental import pallas as pl
from jax.experimental.pallas import tpu as pltpu

BN_EPS = 1e-5


def autopad(k, p=None, d=1):
    if d > 1:
        k = d * (k - 1) + 1 if isinstance(k, int) else [d * (x - 1) + 1 for x in k]
    if p is None:
        p = k // 2 if isinstance(k, int) else [x // 2 for x in k]
    return p


def _pick_tile_m(m):
    # Prefer a tile that divides M so no masking/padding of BN stats is needed.
    for t in (256, 512, 128):
        if m % t == 0:
            return t
    return m  # single full-extent block fallback (always a legal block shape)


def _gemm_stats_kernel(w_ref, p_ref, y_ref, stats_ref):
    # w: (Cout, K)   p: (K, tile_m)   y: (Cout, tile_m)
    # stats: (Cout, 2) accumulator resident in VMEM across the M-tile grid axis.
    i = pl.program_id(0)

    @pl.when(i == 0)
    def _():
        stats_ref[...] = jnp.zeros_like(stats_ref)

    # Conv as GEMM on the MXU; lane-dense (Cout, tile_m) result, f32 accumulate.
    y = jnp.dot(w_ref[...], p_ref[...], preferred_element_type=jnp.float32)
    y_ref[...] = y

    # Cross-tile per-channel partial sums (lane reduce -> XLU), accumulated so
    # the BN statistics are over the full M = N*Hout*Wout regardless of tiling.
    stats_ref[:, 0:1] += jnp.sum(y, axis=1, keepdims=True)
    stats_ref[:, 1:2] += jnp.sum(y * y, axis=1, keepdims=True)


def _bn_affine_kernel(params_ref, y_ref, o_ref, *, m_total):
    # params: (Cout, 4) packed [sum, sumsq, gamma, beta];  y/o: (Cout, tile_m)
    p = params_ref[...]
    inv_m = 1.0 / m_total
    mean = p[:, 0:1] * inv_m
    ex2 = p[:, 1:2] * inv_m
    gamma = p[:, 2:3]
    beta = p[:, 3:4]
    var = jnp.maximum(ex2 - mean * mean, 0.0)      # biased variance (BN training mode)
    inv_std = jax.lax.rsqrt(var + BN_EPS)
    scale = gamma * inv_std                        # per-channel (Cout, 1)
    bias = beta - mean * scale
    # Single FMA per element, lane-dense unmasked stores.
    o_ref[...] = y_ref[...] * scale + bias


def conv_bn_forward(x_nchw, weight_oihw, gamma, beta, stride, padding):
    """x_nchw: (N, Cin, H, W) f32.  weight_oihw: (Cout, Cin, kH, kW) f32."""
    n, cin, h, w = x_nchw.shape
    cout, _, kh, kw = weight_oihw.shape
    s, p = stride, padding

    h_out = (h + 2 * p - kh) // s + 1
    w_out = (w + 2 * p - kw) // s + 1
    m_rows = n * h_out * w_out
    k_dim = kh * kw * cin

    # ---- glue: NCHW -> NHWC, pad, im2col built directly in transposed (K, M) form ----
    x_nhwc = jnp.transpose(x_nchw, (0, 2, 3, 1)).astype(jnp.float32)
    xp = jnp.pad(x_nhwc, ((0, 0), (p, p), (p, p), (0, 0)))
    cols = []
    for ih in range(kh):
        for iw in range(kw):
            sl = xp[:, ih:ih + (h_out - 1) * s + 1:s, iw:iw + (w_out - 1) * s + 1:s, :]
            cols.append(jnp.transpose(sl, (3, 0, 1, 2)).reshape(cin, m_rows))
    patches_t = jnp.concatenate(cols, axis=0)            # (K, M), K ordering (kh, kw, cin)

    # weight (Cout, Cin, kH, kW) -> (Cout, kH, kW, Cin) -> (Cout, K), matching K ordering.
    w_t = jnp.transpose(weight_oihw, (0, 2, 3, 1)).reshape(cout, k_dim).astype(jnp.float32)

    tile_m = _pick_tile_m(m_rows)
    m_tiles = m_rows // tile_m

    # ---- kernel 1: conv GEMM (lane-dense y^T) + cross-tile BN stat accumulation ----
    y_t, stats = pl.pallas_call(
        _gemm_stats_kernel,
        grid=(m_tiles,),
        in_specs=[
            pl.BlockSpec((cout, k_dim), lambda i: (0, 0)),
            pl.BlockSpec((k_dim, tile_m), lambda i: (0, i)),
        ],
        out_specs=(
            pl.BlockSpec((cout, tile_m), lambda i: (0, i)),
            pl.BlockSpec((cout, 2), lambda i: (0, 0)),     # accumulator: same block each step
        ),
        out_shape=(
            jax.ShapeDtypeStruct((cout, m_rows), jnp.float32),
            jax.ShapeDtypeStruct((cout, 2), jnp.float32),
        ),
        compiler_params=pltpu.CompilerParams(dimension_semantics=("arbitrary",)),
    )(w_t, patches_t)

    # ---- pack per-channel params into one array: [sum, sumsq, gamma, beta] ----
    params = jnp.concatenate(
        [stats,
         gamma.reshape(cout, 1).astype(jnp.float32),
         beta.reshape(cout, 1).astype(jnp.float32)],
        axis=1,
    )

    # ---- kernel 2: fused BN normalize + affine epilogue, fully parallel over M tiles ----
    out_t = pl.pallas_call(
        functools.partial(_bn_affine_kernel, m_total=float(m_rows)),
        grid=(m_tiles,),
        in_specs=[
            pl.BlockSpec((cout, 4), lambda i: (0, 0)),
            pl.BlockSpec((cout, tile_m), lambda i: (0, i)),
        ],
        out_specs=pl.BlockSpec((cout, tile_m), lambda i: (0, i)),
        out_shape=jax.ShapeDtypeStruct((cout, m_rows), jnp.float32),
        compiler_params=pltpu.CompilerParams(dimension_semantics=("parallel",)),
    )(params, y_t)

    # ---- glue: (Cout, M) -> (Cout, N, Hout, Wout) -> NCHW ----
    return jnp.transpose(out_t.reshape(cout, n, h_out, w_out), (1, 0, 2, 3))


def _reference(x_nchw, weight_oihw, gamma, beta, stride, padding):
    y = jax.lax.conv_general_dilated(
        x_nchw, weight_oihw,
        window_strides=(stride, stride),
        padding=[(padding, padding), (padding, padding)],
        dimension_numbers=("NCHW", "OIHW", "NCHW"),
    )
    mean = jnp.mean(y, axis=(0, 2, 3), keepdims=True)
    var = jnp.var(y, axis=(0, 2, 3), keepdims=True)   # biased, as in BN training mode
    y_hat = (y - mean) / jnp.sqrt(var + BN_EPS)
    return y_hat * gamma.reshape(1, -1, 1, 1) + beta.reshape(1, -1, 1, 1)


if __name__ == "__main__":
    # Module hyper-params: ConvBn(in_c=4, out_c=8, k=3, s=1) -> padding = autopad(3, 1, 1) = 1
    in_c, out_c, k, s, d = 4, 8, 3, 1, 1
    pad = autopad(k, s, d)   # module passes stride as `p` -> padding == s == 1 here

    key = jax.random.PRNGKey(0)
    kx, kw_, kg, kb = jax.random.split(key, 4)
    x = jax.random.normal(kx, (2, in_c, 16, 16), dtype=jnp.float32)
    weight = jax.random.normal(kw_, (out_c, in_c, k, k), dtype=jnp.float32) * 0.1
    gamma = 1.0 + 0.1 * jax.random.normal(kg, (out_c,), dtype=jnp.float32)
    beta = 0.1 * jax.random.normal(kb, (out_c,), dtype=jnp.float32)

    out = jax.block_until_ready(
        conv_bn_forward(x, weight, gamma, beta, stride=s, padding=pad))
    ref = jax.block_until_ready(_reference(x, weight, gamma, beta, s, pad))

    assert out.shape == ref.shape, (out.shape, ref.shape)
    assert np.allclose(np.asarray(out), np.asarray(ref), atol=1e-3, rtol=1e-3)

    print("KERNEL_OK")
</pallas_src>

<mosaic_0001>
module attributes {stable_mosaic.version = 11 : i64} {
  func.func @_gemm_stats_kernel(%arg0: i32, %arg1: memref<8x36xf32, #tpu.memory_space<vmem>>, %arg2: memref<36x256xf32, #tpu.memory_space<vmem>>, %arg3: memref<8x256xf32, #tpu.memory_space<vmem>>, %arg4: memref<8x2xf32, #tpu.memory_space<vmem>>) attributes {dimension_semantics = [#tpu.dimension_semantics<arbitrary>], iteration_bounds = array<i64: 2>, scalar_prefetch = 0 : i64, scratch_operands = 0 : i64, tpu.core_type = #tpu.core_type<tc>, window_params = [{pipeline_mode = #tpu.pipeline_mode<synchronous>, transform_indices = @transform_0, window_bounds = array<i64: 8, 36>}, {transform_indices = @transform_1, window_bounds = array<i64: 36, 256>}, {transform_indices = @transform_2, window_bounds = array<i64: 8, 256>}, {pipeline_mode = #tpu.pipeline_mode<synchronous>, transform_indices = @transform_3, window_bounds = array<i64: 8, 2>}]} {
    %c0_i32 = arith.constant 0 : i32
    %0 = arith.cmpi eq, %arg0, %c0_i32 : i32
    %1 = arith.extui %0 : i1 to i32
    %c0_i32_0 = arith.constant 0 : i32
    %2 = arith.cmpi ne, %1, %c0_i32_0 : i32
    scf.if %2 {
      %cst_15 = arith.constant 0.000000e+00 : f32
      %18 = vector.broadcast %cst_15 : f32 to vector<8x2xf32>
      %c0_16 = arith.constant 0 : index
      %c0_17 = arith.constant 0 : index
      %19 = vector.load %arg4[%c0_16, %c0_17] : memref<8x2xf32, #tpu.memory_space<vmem>>, vector<8x2xf32>
      tpu.vector_store %arg4[%c0_16, %c0_17], %18 {strides = array<i32>} : memref<8x2xf32, #tpu.memory_space<vmem>>, vector<8x2xf32>,
    } else {
    }
    %c0 = arith.constant 0 : index
    %c0_1 = arith.constant 0 : index
    %3 = vector.load %arg1[%c0, %c0_1] : memref<8x36xf32, #tpu.memory_space<vmem>>, vector<8x36xf32>
    %c0_2 = arith.constant 0 : index
    %c0_3 = arith.constant 0 : index
    %4 = vector.load %arg2[%c0_2, %c0_3] : memref<36x256xf32, #tpu.memory_space<vmem>>, vector<36x256xf32>
    %cst = arith.constant dense<0.000000e+00> : vector<8x256xf32>
    %5 = tpu.matmul %3, %4, %cst {dimension_numbers = #tpu.dot_dimension_numbers<[1], [0], [0], [1], [0, 0, 1, 1], [], []>} : vector<8x36xf32>, vector<36x256xf32>, vector<8x256xf32> -> vector<8x256xf32>
    %c0_4 = arith.constant 0 : index
    %c0_5 = arith.constant 0 : index
    %6 = vector.load %arg3[%c0_4, %c0_5] : memref<8x256xf32, #tpu.memory_space<vmem>>, vector<8x256xf32>
    tpu.vector_store %arg3[%c0_4, %c0_5], %5 {strides = array<i32>} : memref<8x256xf32, #tpu.memory_space<vmem>>, vector<8x256xf32>,
    %c0_6 = arith.constant 0 : index
    %c0_7 = arith.constant 0 : index
    %7 = vector.load %arg4[%c0_6, %c0_7] : memref<8x2xf32, #tpu.memory_space<vmem>>, vector<8x1xf32>
    %cst_8 = arith.constant dense<0.000000e+00> : vector<8xf32>
    %8 = vector.multi_reduction <add>, %5, %cst_8 [1] : vector<8x256xf32> to vector<8xf32>
    %9 = vector.shape_cast %8 : vector<8xf32> to vector<8x1xf32>
    %10 = arith.addf %7, %9 : vector<8x1xf32>
    %c0_9 = arith.constant 0 : index
    %c0_10 = arith.constant 0 : index
    %11 = vector.load %arg4[%c0_9, %c0_10] : memref<8x2xf32, #tpu.memory_space<vmem>>, vector<8x1xf32>
    tpu.vector_store %arg4[%c0_9, %c0_10], %10 {strides = array<i32>} : memref<8x2xf32, #tpu.memory_space<vmem>>, vector<8x1xf32>,
    %c0_11 = arith.constant 0 : index
    %c1 = arith.constant 1 : index
    %12 = vector.load %arg4[%c0_11, %c1] : memref<8x2xf32, #tpu.memory_space<vmem>>, vector<8x1xf32>
    %13 = arith.mulf %5, %5 : vector<8x256xf32>
    %cst_12 = arith.constant dense<0.000000e+00> : vector<8xf32>
    %14 = vector.multi_reduction <add>, %13, %cst_12 [1] : vector<8x256xf32> to vector<8xf32>
    %15 = vector.shape_cast %14 : vector<8xf32> to vector<8x1xf32>
    %16 = arith.addf %12, %15 : vector<8x1xf32>
    %c0_13 = arith.constant 0 : index
    %c1_14 = arith.constant 1 : index
    %17 = vector.load %arg4[%c0_13, %c1_14] : memref<8x2xf32, #tpu.memory_space<vmem>>, vector<8x1xf32>
    tpu.vector_store %arg4[%c0_13, %c1_14], %16 {strides = array<i32>} : memref<8x2xf32, #tpu.memory_space<vmem>>, vector<8x1xf32>,
    return
  }
  func.func @transform_0(%arg0: i32) -> (i32, i32) {
    %c0_i32 = arith.constant 0 : i32
    %c0_i32_0 = arith.constant 0 : i32
    %c0_i32_1 = arith.constant 0 : i32
    return %c0_i32, %c0_i32_0 : i32, i32
  }
  func.func @transform_1(%arg0: i32) -> (i32, i32) {
    %c0_i32 = arith.constant 0 : i32
    %c0_i32_0 = arith.constant 0 : i32
    return %c0_i32, %arg0 : i32, i32
  }
  func.func @transform_2(%arg0: i32) -> (i32, i32) {
    %c0_i32 = arith.constant 0 : i32
    %c0_i32_0 = arith.constant 0 : i32
    return %c0_i32, %arg0 : i32, i32
  }
  func.func @transform_3(%arg0: i32) -> (i32, i32) {
    %c0_i32 = arith.constant 0 : i32
    %c0_i32_0 = arith.constant 0 : i32
    %c0_i32_1 = arith.constant 0 : i32
    return %c0_i32, %c0_i32_0 : i32, i32
  }
}

</mosaic_0001>

<bundles_post_ra>
// kernel: tpu_custom_call.1
= control target key start
LH: loop header
LB: loop body
LE: loop exit
PB: predicated region body
PF: predicated region fallthrough
CT: control target
= control target key end

     0   :  { %9 = vsyncpa [#allocation3], 0  ;;  %s898_s0 = inlined_call_operand.hbm [shape: f32[8,36], index: 0, kind: input, shape index: {}]   ;;  %s899_s1 = inlined_call_operand.hbm [shape: f32[36,512], index: 1, kind: input, shape index: {}]   ;;  %s900_s2 = inlined_call_operand.hbm [shape: f32[8,512], index: 2, kind: output, shape index: {0}]   ;;  %s901_s3 = inlined_call_operand.vmem [shape: f32[8,2], index: 3, kind: output, shape index: {1}]  }
   0x1   :  { %10 = vsyncpa [#allocation6], 0 }
   0x2   :  { %12 = vsyncpa [#allocation6 + $0x1], 0 }
   0x3   :  { %13 = vsyncpa [#allocation4], 0 }
   0x4   :  { %15 = vsyncpa [#allocation4 + $0x1], 0  ;;  %s672_s12 = smov 0   ;;  %s674_s13 = smov 0  }
   0x5   :  { %s676_s14 = smov 0   ;;  %s678_s15 = smov 0  }
   0x6 LB: > { %s693_s16 = sadd.s32 4294967295, %s642_s15   ;;  %s422_s17 = sadd.s32 4294967294, %s642_s15   ;;  %s642_s15 = sphi %s678_s15, %s927_s15   ;;  %s638_s14 = sphi %s676_s14, %s926_s14   ;;  %s634_s13 = sphi %s674_s13, %s925_s13   ;;  %s630_s12 = sphi %s672_s12, %s924_s12  }
   0x7   : > { %s697_s18 = sadd.s32 1, %s642_s15   ;;  %s49_s19 = sadd.s32 1, %s638_s14 }
   0x8   : > { %s46_s20 = ssub.s32 %s642_s15, %s697_s18  ;;  %p56_p0 = scmp.ne.s32.totalorder %s638_s14, %s634_s13 }
   0x9   : > { %p47_p1 = scmp.eq.s32.totalorder %s46_s20, 0  ;;  %p57_p2 = scmp.eq.s32.totalorder %s642_s15, 0 }
   0xa   : > { %p62_p3 = scmp.ne.s32.totalorder %s634_s13, %s630_s12  ;;  %p902_p4 = scmp.eq.s32.totalorder %s693_s16, 0 }
   0xb   : > { %s709_s21 = scalar_select %p47_p1, %s638_s14, %s49_s19  }
   0xc   : > { %p711_p5 = por %p57_p2, %p56_p0  ;;  %p717_p6 = por %p902_p4, %p62_p3 }
   0xd   : > { %p86_p7 = scmp.eq.s32.totalorder %s693_s16, 1  ;;  %p92_p8 = scmp.eq.s32.totalorder %s422_s17, 1 }
   0xe   : > { %s908_s23 = scalar_select %p717_p6, 1, 0 }
   0xf   : > { %p423_p9 = scmp.ge.s32.totalorder %s642_s15, 1  ;;  %p120_p10 = scmp.lt.s32.totalorder %s642_s15, 3 }
  0x10   : > { %p724_p11 = por %p86_p7, %p56_p0  ;;  %p728_p12 = por %p92_p8, %p62_p3 }
  0x11   : > { %p732_p13 = pnand %p423_p9, %p120_p10  ;;  %s644_s27 = smov [#allocation2]  }
  0x12   : > { %s909_s24 = scalar_select %p724_p11, 1, 0 }
  0x13   : > { %s910_s25 = scalar_select %p728_p12, 1, 0 }
  0x14   : > { %s911_s26 = scalar_select %p732_p13, 1, 0 }
  0x15   : > { %p460_p4 = pneg %p732_p13  ;;  %s133_s28 = sshll.u32 %s644_s27, 4  ;;  %s134_s28 = int_to_ptr.vmem [resolvable:$true] %s133_s28 }
  0x16   : > { %p473_p0 = scmp.lt.s32.totalorder %s642_s15, 2  ;;  %p912_p7 = scmp.eq.s32.totalorder %s693_s16, 0 }
  0x17   : > { %s144_s30 = sand.u32 1, %s638_s14   ;;  %s514_s8 = scalar_lea.hbm %s898_s0, 128 }
  0x18   : > { %p743_p6 = pnand %p460_p4, %p912_p7  ;;  %p750_p3 = pnand %p473_p0, %p711_p5 }
  0x19   : > { %s450_s5 = smul.u32 80, %s144_s30  ;;  %p515_p8 = scmp.ne.s32.totalorder %s898_s0, %s514_s8 }
  0x1a   : > { %s914_s4 = scalar_select %p750_p3, 1, 0 }
  0x1b   : > { %p516_p4 = pneg %p743_p6  ;;  %p521_p5 = scmp.lt.u32.totalorder %s514_s8, %s898_s0 }
  0x1d   : > { %p517_p9 = pnand %p516_p4, %p515_p8 }
  0x1f   : > { %p518_p10 = pneg %p517_p9 }
  0x21   : > { %p523_p0 = pnand %p521_p5, %p518_p10 }
  0x23   : > { %526 = shalt.err (!%p523_p0)
}
  0x24   : > { %s527_s19 = scalar_lea.vmem %s134_s28, 128  ;;  %p535_p12 = scmp.lt.s32.totalorder %s134_s28, %s134_s28 }
  0x25   : > { %p528_p7 = scmp.ne.s32.totalorder %s134_s28, %s527_s19  ;;  %p536_p11 = scmp.lt.s32.totalorder %s527_s19, %s527_s19 }
  0x27   : > { %p530_p2 = pnand %p528_p7, %p516_p4  ;;  %p537_p13 = por %p536_p11, %p535_p12 }
  0x29   : > { %p531_p1 = pneg %p530_p2 }
  0x2b   : > { %p538_p3 = pnand %p537_p13, %p531_p1 }
  0x2d   : > { %541 = shalt.err (!%p538_p3)
}
  0x2e   : > { %463 = dma.hbm_to_vmem [thread:$0]  (!%p743_p6), %s898_s0, 128, %s134_s28, [#allocation3]  }
  0x2f   : > { %s440_s27 = sshll.u32 %s642_s15, 8  ;;  %s148_s6 = scalar_lea.vmem [#allocation5], %s450_s5 }
  0x30   : > { %s155_s7 = sshll.u32 %s148_s6, 4  ;;  %s774_s10 = scalar_lea.hbm %s899_s1, %s440_s27  ;;  %s776_s7 = int_to_ptr.vmem [resolvable:$true] %s155_s7 }
  0x31   : > { %s778_s29 = scalar_lea.sflag [#allocation6], %s144_s30  ;;  %s542_s11 = scalar_lea.hbm %s774_s10, 1280 }
  0x32   : > { %p543_p11 = scmp.ne.s32.totalorder %s774_s10, %s542_s11  ;;  %p915_p12 = scmp.ne.s32.totalorder %s914_s4, 0 }
  0x33   : > { %s547_s17 = scalar_lea.hbm %s899_s1, 2560  ;;  %p548_p2 = scmp.lt.u32.totalorder %s774_s10, %s899_s1 }
  0x34   : > { %p544_p6 = pneg %p915_p12  ;;  %p549_p3 = scmp.lt.u32.totalorder %s547_s17, %s542_s11 }
  0x35   : > { %p551_p4 = scmp.lt.u32.totalorder %s542_s11, %s774_s10 }
  0x36   : > { %p545_p13 = pnand %p544_p6, %p543_p11  ;;  %p550_p8 = por %p549_p3, %p548_p2 }
  0x38   : > { %p546_p1 = pneg %p545_p13  ;;  %p552_p9 = por %p551_p4, %p550_p8 }
  0x3a   : > { %p553_p10 = pnand %p552_p9, %p546_p1 }
  0x3c   : > { %556 = shalt.err (!%p553_p10)
}
  0x3d   : > { %s557_s30 = scalar_lea.vmem %s776_s7, 1280  ;;  %s645_s22 = smov [#allocation5]  }
  0x3e   : > { %p558_p5 = scmp.ne.s32.totalorder %s776_s7, %s557_s30  ;;  %s562_s27 = sshll.u32 %s645_s22, 4  ;;  %s563_s27 = int_to_ptr.vmem [resolvable:$false] %s562_s27 }
  0x3f   : > { %s564_s6 = scalar_lea.vmem %s563_s27, 2560  ;;  %p565_p11 = scmp.lt.s32.totalorder %s776_s7, %s563_s27 }
  0x40   : > { %p560_p0 = pnand %p558_p5, %p544_p6  ;;  %p566_p13 = scmp.lt.s32.totalorder %s564_s6, %s557_s30 }
  0x42   : > { %p561_p7 = pneg %p560_p0  ;;  %p567_p2 = por %p566_p13, %p565_p11 }
  0x44   : > { %p568_p3 = pnand %p567_p2, %p561_p7 }
  0x46   : > { %571 = shalt.err (!%p568_p3)
}
  0x47   : > { %s646_s8 = smov 512   ;;  %s647_s9 = smov 256  }
  0x48   : > { %s648_s11 = smov 16   ;;  %p916_p6 = scmp.ne.s32.totalorder %s911_s26, 0 }
  0x49   : > { %467 = dma.hbm_to_vmem [thread:$0]  (!%p915_p12), %s774_s10, 1280, %s776_s7, %s778_s29, %s646_s8, %s647_s9, %s648_s11  }
  0x4a   : > { %167 = sbr.rel (%p916_p6) target bundleno = 479 (0x1df), region = 28  ;;  %p917_p1 = scmp.eq.s32.totalorder (!%p916_p6), %s693_s16, 0 }
  0x51   : > { %617 = dma.done.wait (%p917_p1), [#allocation3], 128   ;;  %p918_p8 = pmov %p917_p1 }
  0x52   : > { %s813_s28 = sand.u32 1, %s634_s13   ;;  %p919_p12 = scmp.ne.s32.totalorder %s908_s23, 0 }
  0x53   : > { %619 = vsyncadd (%p918_p8), [#allocation3], 4294967168  ;;  %s451_s5 = smul.u32 80, %s813_s28  ;;  %s174_s17 = scalar_lea.sflag [#allocation6], %s813_s28 }
  0x55   : > { %s817_s19 = scalar_lea.vmem [#allocation5], %s451_s5 }
  0x56   : > { %621 = dma.done.wait (%p919_p12), %s174_s17, 1280  }
  0x57   : > { %623 = vsyncadd (%p919_p12), %s174_s17, 4294966016  ;;  %s430_s26 = sshll.u32 %s813_s28, 4  ;;  %p920_p4 = scmp.ne.s32.totalorder %s693_s16, 0 }
  0x58   : > { %s824_s4 = scalar_lea.vmem [#allocation7], %s430_s26  ;;  %vm206_vm0 = vcmask (!%p920_p4), 15360   ;;  %v649_v0 = vmov (!%p920_p4), 0.0  }
  0x59   : > { %205 = sbr.rel (%p920_p4) target bundleno = 96 (0x60), region = 40  ;;  %207 = vst.msk [vmem:[%s901_s3] sm:$0xff] (!%p920_p4), %vm206_vm0, %v649_v0 }
  0x60 PF: > { %v210_v1 = vld [vmem:[%s817_s19 + $0x8] sm:$0xff]  ;;  %v212_v2 = vld [vmem:[%s817_s19 + $0x18] sm:$0xff]  ;;  %v209_v3 = vld [vmem:[%s817_s19] sm:$0xff]  ;;  %v650_v8 = vmov 0.0   ;;  %vm223_vm1 = vcmask 1043456   ;;  %vm219_vm2 = vcmask 293888  }
  0x61   : > { %v442_v4 = vpack.c.bf16 %v212_v2, %v210_v1  ;;  %v211_v5 = vld [vmem:[%s817_s19 + $0x10] sm:$0xff]  ;;  %v214_v6 = vld [vmem:[%s817_s19 + $0x28] sm:$0xff]  ;;  %v216_v7 = vld [vmem:[%s817_s19 + $0x38] sm:$0xff]  ;;  %294 = vmatprep.mubr.f32.mxu0 %v650_v8  ;;  %s441_s23 = sshll.u32 %s693_s16, 8  ;;  %s334_s29 = sshll.u32 %s824_s4, 4  ;;  %s335_s29 = int_to_ptr.vmem [resolvable:$true] %s334_s29 }
  0x62   : > { %v444_v9 = vpack.c.bf16 %v211_v5, %v209_v3  ;;  %v446_v10 = vpack.c.bf16 %v216_v7, %v214_v6  ;;  %v213_v11 = vld [vmem:[%s817_s19 + $0x20] sm:$0xff]  ;;  %v215_v12 = vld [vmem:[%s817_s19 + $0x30] sm:$0xff]  ;;  %v218_v14 = vld [vmem:[%s817_s19 + $0x48] sm:$0xf]  ;;  %s848_s22 = scalar_lea.hbm %s900_s2, %s441_s23  ;;  %s320_s27 = scalar_lea.sflag [#allocation4], %s813_s28 }
  0x63   : > { %443 = vmatprep.subr.bf16.mxu0 %v442_v4  ;;  %v448_v13 = vpack.c.bf16 %v215_v12, %v213_v11  ;;  %v217_v15 = vld [vmem:[%s817_s19 + $0x40] sm:$0xf]  ;;  %v208_v16 = vld [vmem:[#allocation2] sm:$0xff]  ;;  %s572_s6 = scalar_lea.vmem %s335_s29, 256  ;;  %p921_p10 = scmp.ne.s32.totalorder %s909_s24, 0 }
  0x64   : > { %445 = vmatpush1.bf16.msra.mxu0 %v444_v9  ;;  %p573_p9 = scmp.ne.s32.totalorder %s335_s29, %s572_s6  ;;  %s651_s8 = smov [#allocation7]  }
  0x65   : > { %447 = vmatprep.subr.bf16.mxu0 %v446_v10  ;;  %s576_s9 = sshll.u32 %s651_s8, 4  ;;  %s577_s9 = int_to_ptr.vmem [resolvable:$false] %s576_s9 }
  0x66   : > { %p574_p5 = pnand %p573_p9, %p921_p10  ;;  %s578_s11 = scalar_lea.vmem %s577_s9, 512 }
  0x67   : > { %p579_p7 = scmp.lt.s32.totalorder %s335_s29, %s577_s9  ;;  %p580_p11 = scmp.lt.s32.totalorder %s578_s11, %s572_s6 }
  0x68   : > { %449 = vmatpush1.bf16.msra.mxu0 %v448_v13  ;;  %p575_p0 = pneg %p574_p5 }
  0x69   : > { %432 = vmatprep.subr.msk.mxu0 %vm223_vm1, %v218_v14  ;;  %p581_p13 = por %p580_p11, %p579_p7 }
  0x6b   : > { %p582_p2 = pnand %p581_p13, %p575_p0 }
  0x6c   : > { %433 = vmatpush1.msk.msra.mxu0 %vm223_vm1, %v217_v15 }
  0x6d   : > { %434 = vmatmul.mubr.msk.f32.vlgmr.msra.gmra.mrb[0].mxu0 %vm219_vm2, %v208_v16 }
 0x140   : > { %v296_v17 = vpop.f32.mrb[0].mxu0 }
 0x141   : > { %301 = vst [vmem:[%s824_s4] sm:$0xff] %v296_v17  ;;  %v298_v18 = vpop.f32.mrb[1].mxu0  ;;  %v311_v19 = vmul.f32 %v296_v17, %v296_v17 }
 0x142   : > { %302 = vst [vmem:[%s824_s4 + $0x8] sm:$0xff] %v298_v18  ;;  %v312_v20 = vmul.f32 %v298_v18, %v298_v18  ;;  %v304_v21 = vadd.f32 %v298_v18, %v296_v17 }
 0x144   : > { %305 = vadd.xlane.f32.xlu0 %v304_v21  ;;  %v313_v22 = vadd.f32 %v312_v20, %v311_v19 }
 0x148   : > { %314 = vadd.xlane.f32.xlu0 %v313_v22 }
 0x149   : > { %585 = shalt.err (!%p582_p2)
}
 0x14a   : > { %s586_s16 = scalar_lea.hbm %s848_s22, 256  ;;  %s590_s17 = scalar_lea.hbm %s900_s2, 512 }
 0x14b   : > { %p587_p3 = scmp.ne.s32.totalorder %s848_s22, %s586_s16  ;;  %p591_p8 = scmp.lt.u32.totalorder %s848_s22, %s900_s2 }
 0x14c   : > { %p592_p12 = scmp.lt.u32.totalorder %s590_s17, %s586_s16  ;;  %p594_p9 = scmp.lt.u32.totalorder %s586_s16, %s848_s22 }
 0x14d   : > { %p588_p6 = pnand %p587_p3, %p921_p10 }
 0x14e   : > { %p593_p4 = por %p592_p12, %p591_p8 }
 0x14f   : > { %p589_p1 = pneg %p588_p6 }
 0x150   : > { %p595_p5 = por %p594_p9, %p593_p4 }
 0x152   : > { %p596_p0 = pnand %p595_p5, %p589_p1 }
 0x154   : > { %599 = shalt.err (!%p596_p0)
}
 0x155   : > { %458 = dma.vmem_to_hbm [thread:$0]  (%p921_p10), %s335_s29, 256, %s848_s22, %s320_s27   ;;  %v303_v23 = vld [vmem:[%s901_s3] sm:$0xff]  ;;  %vm308_vm3 = vcmask 7168   ;;  %vm317_vm4 = vcmask 15368  }
 0x1d1   : > { %v306_v24 = vpop.xlane.xlu0 %305 }
 0x1d2   : > { %v307_v25 = vadd.f32 %v306_v24, %v303_v23 }
 0x1d4   : > { %309 = vst.msk [vmem:[%s901_s3] sm:$0xff] %vm308_vm3, %v307_v25 }
 0x1d5   : > { %v315_v27 = vpop.xlane.xlu0 %314 }
 0x1db   : > { %v310_v26 = vld [vmem:[%s901_s3] sm:$0xff] }
 0x1dc   : > { %v316_v28 = vadd.f32 %v315_v27, %v310_v26 }
 0x1de   : > { %318 = vst.msk [vmem:[%s901_s3] sm:$0xff] %vm317_vm4, %v316_v28 }
 0x1df PF: > { %s352_s22 = sand.u32 1, %s630_s12   ;;  %p922_p10 = scmp.ne.s32.totalorder %s910_s25, 0 }
 0x1e0   : > { %p923_p7 = scmp.ge.s32.totalorder %s642_s15, 2  ;;  %s353_s27 = scalar_lea.sflag [#allocation4], %s352_s22 }
 0x1e2   : > { %p469_p11 = pnand %p923_p7, %p922_p10 }
 0x1e4   : > { %625 = dma.done.wait (!%p469_p11), %s353_s27, 256  }
 0x1e5   : > { %627 = vsyncadd (!%p469_p11), %s353_s27, 4294967040  ;;  %p18_p13 = scmp.ge.s32.totalorder %s697_s18, 4   ;;  %s924_s12 = smov %s634_s13 }
 0x1e6   : > { %s925_s13 = smov %s638_s14  ;;  %s926_s14 = smov %s709_s21 }
 0x1e7   : > { %s927_s15 = smov %s697_s18  ;;  %20 = sbr.rel (!%p18_p13) target bundleno = 6 (0x6), region = 90 }
 0x1ee   :  { %358 = vsyncpa [#allocation3], 1 }
 0x1ef   :  { %360 = vsyncpa [#allocation3 + $0x1], 1 }
 0x1f0   :  { %361 = vsyncpa [#allocation6], 1 }
 0x1f1   :  { %363 = vsyncpa [#allocation6 + $0x1], 1 }
 0x1f2   :  { %364 = vsyncpa [#allocation4], 1 }
 0x1f3   :  { %366 = vsyncpa [#allocation4 + $0x1], 1 }

</bundles_post_ra>
